<compile_context>
chip_gen: v6e
topology: v6e:2x2x1
jax: 0.10.0
libtpu: 0.0.40
codegen_flags: <defaults>
</compile_context>

<pallas_src>
import functools

import jax
import jax.numpy as jnp
import numpy as np
from jax import lax
from jax.experimental import pallas as pl
from jax.experimental.pallas import tpu as pltpu

LEAK = 0.2
GP = 128   # lane width of pooled / fc activations (one vreg row)
CG = 32    # per-pooled-position channel group (20 real conv1 channels + 12 zero pad)


def _round_up(x, m):
    return ((x + m - 1) // m) * m


def _cdiv(a, b):
    return -(-a // b)


def policy_cnn_kernel(x_ref, w1_ref, b1_ref, wslab_ref, bslab_ref, out_ref):
    """One batch tile.
    x_ref:     (TB, Kp)      raw flattened NCHW input (zero-padded to Kp lanes)
    w1_ref:    (Kp, 4*GP)    fused conv1 weight, one 128-lane view per 2x2 pool tap;
                             within a view, lanes [q*32 : q*32+20] hold the conv1 output
                             channels for pooled position q under that tap.
    b1_ref:    (1, 4*GP)     fused conv1 bias (f32)
    wslab_ref: (4*GP, GP)    [conv2 | fc1 | fc2 | fc3] blocks, zero-padded to GP
    bslab_ref: (4, GP)       [b2 | bf1 | bf2 | bf3], zero-padded to GP (f32)
    out_ref:   (TB, GP)      lane-dense output (real logits in columns [:action_num])
    """
    cdt = w1_ref.dtype
    leaky = lambda v: jnp.maximum(v, LEAK * v)      # mul+max, no cmp+select
    bias = bslab_ref[...]                           # (4, GP) f32

    # conv1 (3x3, pad=1) for all four pool taps in ONE fused matmul; single cast after.
    y = jnp.dot(x_ref[...], w1_ref[...], preferred_element_type=jnp.float32)
    y = leaky(y + b1_ref[...]).astype(cdt)          # (TB, 4*GP)

    # maxpool2d(2, stride=1): elementwise max of the four 128-aligned tap views.
    pooled = jnp.maximum(
        jnp.maximum(y[:, 0 * GP:1 * GP], y[:, 1 * GP:2 * GP]),
        jnp.maximum(y[:, 2 * GP:3 * GP], y[:, 3 * GP:4 * GP]))      # (TB, GP)

    # conv2 (2x2, 20->30): one (TB,128)x(128,128) MXU matmul.
    h = jnp.dot(pooled, wslab_ref[0:GP, :], preferred_element_type=jnp.float32)
    h = leaky(h + bias[0:1, :])                     # (TB, GP), real cols [:30]

    # fc1 / fc2 / fc3 -- all padded to GP lanes; zero rows/cols are inert.
    for li in range(3):
        w = wslab_ref[(1 + li) * GP:(2 + li) * GP, :]
        h = jnp.dot(h.astype(cdt), w, preferred_element_type=jnp.float32) + bias[li + 1:li + 2, :]
        if li < 2:
            h = leaky(h)
    out_ref[...] = h


def build_fused_params(params, input_dim, compute_dtype=jnp.bfloat16):
    """Fold conv structure into lane-aligned matmul weights.  Done ONCE in glue (numpy)."""
    w1, b1, w2, b2, wf1, bf1, wf2, bf2, wf3, bf3 = [np.asarray(p, np.float32) for p in params]
    A = wf3.shape[0]
    assert A <= GP, "action_num must be <= 128 for this kernel"
    K = input_dim * 9
    Kp = _round_up(K, GP)

    # Fused conv1 weight (Kp, 4*GP).  Row index = ci*9 + ih*3 + iw (raw NCHW flatten).
    # Column view t = kh*2+kw (pool tap); within it, lanes [q*32 : q*32+20] (q = ph*2+pw)
    # hold the conv1 output channels at spatial position (ph+kh, pw+kw) with padding=1.
    # Positions shared between taps are simply replicated in the weight columns, so the
    # maxpool is a pure elementwise max of the four views.  Pad rows/lanes stay zero.
    w1f = np.zeros((Kp, 4 * GP), np.float32)
    b1f = np.zeros((1, 4 * GP), np.float32)
    for kh in range(2):
        for kw in range(2):
            t = kh * 2 + kw
            for ph in range(2):
                for pw in range(2):
                    q = ph * 2 + pw
                    oh, ow = ph + kh, pw + kw
                    col0 = t * GP + q * CG
                    for r in range(3):
                        for c in range(3):
                            ih, iw = oh + r - 1, ow + c - 1
                            if 0 <= ih < 3 and 0 <= iw < 3:
                                rows = np.arange(input_dim) * 9 + ih * 3 + iw
                                w1f[rows, col0:col0 + 20] = w1[:, :, r, c].T
                    b1f[0, col0:col0 + 20] = b1

    # Weight slab (4*GP, GP): conv2 (pooled-layout), then fc1, fc2, fc3.
    w2blk = np.zeros((GP, GP), np.float32)
    for ph in range(2):
        for pw in range(2):
            q = ph * 2 + pw
            w2blk[q * CG:q * CG + 20, :30] = w2[:, :, ph, pw].T
    blocks = [w2blk]
    for wmat, nin, nout in ((wf1, 30, 120), (wf2, 120, 84), (wf3, 84, A)):
        blk = np.zeros((GP, GP), np.float32)
        blk[:nin, :nout] = wmat.T
        blocks.append(blk)
    wslab = np.concatenate(blocks, axis=0)

    bslab = np.zeros((4, GP), np.float32)
    bslab[0, :30] = b2
    bslab[1, :120] = bf1
    bslab[2, :84] = bf2
    bslab[3, :A] = bf3

    # bf16 halves the dominant HBM streams (x, weights); biases / accumulation stay f32.
    return (jnp.asarray(w1f, compute_dtype), jnp.asarray(b1f, jnp.float32),
            jnp.asarray(wslab, compute_dtype), jnp.asarray(bslab, jnp.float32))


def _choose_tiling(B, tb):
    """Balanced batch tiles: multiple of 16 rows, >=2 tiles when B allows (2 v7x TCs),
    and an even tile count when it is cheap to get one."""
    sub = 16
    want = max(_cdiv(B, max(tb, sub)), 2 if B > sub else 1)
    tb_eff = _round_up(_cdiv(B, want), sub)
    ntiles = _cdiv(B, tb_eff)
    if ntiles > 1 and ntiles % 2:                    # prefer an even grid for 2-TC sharding
        alt = _round_up(_cdiv(B, ntiles + 1), sub)
        if _cdiv(B, alt) % 2 == 0:
            tb_eff, ntiles = alt, _cdiv(B, alt)
    return tb_eff, ntiles


@functools.partial(jax.jit, static_argnames=("action_num", "tb"))
def policy_cnn_forward(x, fused, *, action_num, tb=1024):
    """x: (B, C_in, 3, 3) float32, NCHW (matches the PyTorch module)."""
    w1f, b1f, wslab, bslab = fused
    B, cin, H, W = x.shape
    assert (H, W) == (3, 3), "PolicyCNN.forward requires 3x3 spatial input"
    K = cin * 9
    Kp = w1f.shape[0]

    tb_eff, ntiles = _choose_tiling(B, tb)
    Bp = tb_eff * ntiles

    # Raw NCHW flatten (no im2col); cast first so the pad writes compute dtype (one pass).
    x_flat = x.reshape(B, K).astype(w1f.dtype)
    x_flat = jnp.pad(x_flat, ((0, Bp - B), (0, Kp - K)))

    def resident(arr):  # weights/biases: constant index_map -> fetched once, stay in VMEM
        return pl.BlockSpec(arr.shape, lambda i: (0, 0))

    out = pl.pallas_call(
        policy_cnn_kernel,
        out_shape=jax.ShapeDtypeStruct((Bp, GP), jnp.float32),
        grid=(ntiles,),
        in_specs=[pl.BlockSpec((tb_eff, Kp), lambda i: (i, 0)),
                  resident(w1f), resident(b1f), resident(wslab), resident(bslab)],
        out_specs=pl.BlockSpec((tb_eff, GP), lambda i: (i, 0)),
        compiler_params=pltpu.CompilerParams(
            dimension_semantics=("parallel",),
            vmem_limit_bytes=48 * 1024 * 1024),
    )(x_flat, w1f, b1f, wslab, bslab)
    # NOTE: padded batch rows carry bias-propagated garbage; always slice before reducing.
    return out[:B, :action_num]


def ref_forward(x, params):
    """Plain-JAX reference mirroring the PyTorch forward (NCHW / OIHW)."""
    w1, b1, w2, b2, wf1, bf1, wf2, bf2, wf3, bf3 = params
    leaky = lambda v: jnp.maximum(v, LEAK * v)
    dn = ('NCHW', 'OIHW', 'NCHW')
    y = lax.conv_general_dilated(x, w1, (1, 1), ((1, 1), (1, 1)),
                                 dimension_numbers=dn) + b1[None, :, None, None]
    y = leaky(y)
    y = lax.reduce_window(y, -jnp.inf, lax.max, (1, 1, 2, 2), (1, 1, 1, 1), 'VALID')
    y = lax.conv_general_dilated(y, w2, (1, 1), 'VALID',
                                 dimension_numbers=dn) + b2[None, :, None, None]
    y = leaky(y)
    y = y.reshape(-1, 30)
    y = leaky(y @ wf1.T + bf1)
    y = leaky(y @ wf2.T + bf2)
    return y @ wf3.T + bf3


def init_params(key, input_dim, action_num):
    ks = jax.random.split(key, 10)
    s = 0.1
    w1 = s * jax.random.normal(ks[0], (20, input_dim, 3, 3), jnp.float32)   # OIHW
    b1 = s * jax.random.normal(ks[1], (20,), jnp.float32)
    w2 = s * jax.random.normal(ks[2], (30, 20, 2, 2), jnp.float32)          # OIHW
    b2 = s * jax.random.normal(ks[3], (30,), jnp.float32)
    wf1 = s * jax.random.normal(ks[4], (120, 30), jnp.float32)              # (out, in)
    bf1 = s * jax.random.normal(ks[5], (120,), jnp.float32)
    wf2 = s * jax.random.normal(ks[6], (84, 120), jnp.float32)
    bf2 = s * jax.random.normal(ks[7], (84,), jnp.float32)
    wf3 = s * jax.random.normal(ks[8], (action_num, 84), jnp.float32)
    bf3 = s * jax.random.normal(ks[9], (action_num,), jnp.float32)
    return (w1, b1, w2, b2, wf1, bf1, wf2, bf2, wf3, bf3)


if __name__ == "__main__":
    # Small, deterministic shapes; B=70 exercises the balanced-tiling + padding path
    # (2 tiles of 48 rows, Bp=96) and keeps the grid >= 2 for v7x core sharding.
    B, INPUT_DIM, ACTION_NUM = 70, 12, 8
    key = jax.random.PRNGKey(0)
    kx, kp = jax.random.split(key)
    x = jax.random.normal(kx, (B, INPUT_DIM, 3, 3), jnp.float32)            # NCHW
    params = init_params(kp, INPUT_DIM, ACTION_NUM)

    ref = jax.block_until_ready(ref_forward(x, params))

    # f32 path — matches the reference tightly.
    fused32 = build_fused_params(params, INPUT_DIM, compute_dtype=jnp.float32)
    out32 = jax.block_until_ready(
        policy_cnn_forward(x, fused32, action_num=ACTION_NUM))
    assert out32.shape == (B, ACTION_NUM)
    np.testing.assert_allclose(np.asarray(out32), np.asarray(ref), rtol=1e-4, atol=1e-4)

    # Default bf16 stream (f32 accumulation) — recommended default on all generations.
    fused16 = build_fused_params(params, INPUT_DIM)
    out16 = jax.block_until_ready(
        policy_cnn_forward(x, fused16, action_num=ACTION_NUM))
    np.testing.assert_allclose(np.asarray(out16), np.asarray(ref), rtol=1e-1, atol=1e-1)

    print("KERNEL_OK")
</pallas_src>

<mosaic_0001>
module attributes {stable_mosaic.version = 11 : i64} {
  func.func @policy_cnn_kernel(%arg0: i32, %arg1: memref<48x128xf32, #tpu.memory_space<vmem>>, %arg2: memref<128x512xf32, #tpu.memory_space<vmem>>, %arg3: memref<1x512xf32, #tpu.memory_space<vmem>>, %arg4: memref<512x128xf32, #tpu.memory_space<vmem>>, %arg5: memref<4x128xf32, #tpu.memory_space<vmem>>, %arg6: memref<48x128xf32, #tpu.memory_space<vmem>>) attributes {dimension_semantics = [#tpu.dimension_semantics<parallel>], iteration_bounds = array<i64: 2>, scalar_prefetch = 0 : i64, scratch_operands = 0 : i64, tpu.core_type = #tpu.core_type<tc>, window_params = [{transform_indices = @transform_0, window_bounds = array<i64: 48, 128>}, {pipeline_mode = #tpu.pipeline_mode<synchronous>, transform_indices = @transform_1, window_bounds = array<i64: 128, 512>}, {pipeline_mode = #tpu.pipeline_mode<synchronous>, transform_indices = @transform_2, window_bounds = array<i64: 1, 512>}, {pipeline_mode = #tpu.pipeline_mode<synchronous>, transform_indices = @transform_3, window_bounds = array<i64: 512, 128>}, {pipeline_mode = #tpu.pipeline_mode<synchronous>, transform_indices = @transform_4, window_bounds = array<i64: 4, 128>}, {transform_indices = @transform_5, window_bounds = array<i64: 48, 128>}]} {
    %c0 = arith.constant 0 : index
    %c0_0 = arith.constant 0 : index
    %0 = vector.load %arg5[%c0, %c0_0] : memref<4x128xf32, #tpu.memory_space<vmem>>, vector<4x128xf32>
    %c0_1 = arith.constant 0 : index
    %c0_2 = arith.constant 0 : index
    %1 = vector.load %arg1[%c0_1, %c0_2] : memref<48x128xf32, #tpu.memory_space<vmem>>, vector<48x128xf32>
    %c0_3 = arith.constant 0 : index
    %c0_4 = arith.constant 0 : index
    %2 = vector.load %arg2[%c0_3, %c0_4] : memref<128x512xf32, #tpu.memory_space<vmem>>, vector<128x512xf32>
    %cst = arith.constant dense<0.000000e+00> : vector<48x512xf32>
    %3 = tpu.matmul %1, %2, %cst {dimension_numbers = #tpu.dot_dimension_numbers<[1], [0], [0], [1], [0, 0, 1, 1], [], []>} : vector<48x128xf32>, vector<128x512xf32>, vector<48x512xf32> -> vector<48x512xf32>
    %c0_5 = arith.constant 0 : index
    %c0_6 = arith.constant 0 : index
    %4 = vector.load %arg3[%c0_5, %c0_6] : memref<1x512xf32, #tpu.memory_space<vmem>>, vector<1x512xf32>
    %5 = vector.broadcast %4 : vector<1x512xf32> to vector<48x512xf32>
    %6 = arith.addf %3, %5 : vector<48x512xf32>
    %cst_7 = arith.constant 2.000000e-01 : f32
    %7 = vector.broadcast %cst_7 : f32 to vector<48x512xf32>
    %8 = arith.mulf %7, %6 : vector<48x512xf32>
    %9 = arith.maximumf %6, %8 : vector<48x512xf32>
    %10 = vector.extract_strided_slice %9 {offsets = [0, 0], sizes = [48, 128], strides = [1, 1]} : vector<48x512xf32> to vector<48x128xf32>
    %11 = vector.extract_strided_slice %9 {offsets = [0, 128], sizes = [48, 128], strides = [1, 1]} : vector<48x512xf32> to vector<48x128xf32>
    %12 = arith.maximumf %10, %11 : vector<48x128xf32>
    %13 = vector.extract_strided_slice %9 {offsets = [0, 256], sizes = [48, 128], strides = [1, 1]} : vector<48x512xf32> to vector<48x128xf32>
    %14 = vector.extract_strided_slice %9 {offsets = [0, 384], sizes = [48, 128], strides = [1, 1]} : vector<48x512xf32> to vector<48x128xf32>
    %15 = arith.maximumf %13, %14 : vector<48x128xf32>
    %16 = arith.maximumf %12, %15 : vector<48x128xf32>
    %c0_8 = arith.constant 0 : index
    %c0_9 = arith.constant 0 : index
    %17 = vector.load %arg4[%c0_8, %c0_9] : memref<512x128xf32, #tpu.memory_space<vmem>>, vector<128x128xf32>
    %cst_10 = arith.constant dense<0.000000e+00> : vector<48x128xf32>
    %18 = tpu.matmul %16, %17, %cst_10 {dimension_numbers = #tpu.dot_dimension_numbers<[1], [0], [0], [1], [0, 0, 1, 1], [], []>} : vector<48x128xf32>, vector<128x128xf32>, vector<48x128xf32> -> vector<48x128xf32>
    %19 = vector.extract_strided_slice %0 {offsets = [0, 0], sizes = [1, 128], strides = [1, 1]} : vector<4x128xf32> to vector<1x128xf32>
    %20 = vector.broadcast %19 : vector<1x128xf32> to vector<48x128xf32>
    %21 = arith.addf %18, %20 : vector<48x128xf32>
    %cst_11 = arith.constant 2.000000e-01 : f32
    %22 = vector.broadcast %cst_11 : f32 to vector<48x128xf32>
    %23 = arith.mulf %22, %21 : vector<48x128xf32>
    %24 = arith.maximumf %21, %23 : vector<48x128xf32>
    %c128 = arith.constant 128 : index
    %c0_12 = arith.constant 0 : index
    %25 = vector.load %arg4[%c128, %c0_12] : memref<512x128xf32, #tpu.memory_space<vmem>>, vector<128x128xf32>
    %cst_13 = arith.constant dense<0.000000e+00> : vector<48x128xf32>
    %26 = tpu.matmul %24, %25, %cst_13 {dimension_numbers = #tpu.dot_dimension_numbers<[1], [0], [0], [1], [0, 0, 1, 1], [], []>} : vector<48x128xf32>, vector<128x128xf32>, vector<48x128xf32> -> vector<48x128xf32>
    %27 = vector.extract_strided_slice %0 {offsets = [1, 0], sizes = [1, 128], strides = [1, 1]} : vector<4x128xf32> to vector<1x128xf32>
    %28 = vector.broadcast %27 : vector<1x128xf32> to vector<48x128xf32>
    %29 = arith.addf %26, %28 : vector<48x128xf32>
    %cst_14 = arith.constant 2.000000e-01 : f32
    %30 = vector.broadcast %cst_14 : f32 to vector<48x128xf32>
    %31 = arith.mulf %30, %29 : vector<48x128xf32>
    %32 = arith.maximumf %29, %31 : vector<48x128xf32>
    %c256 = arith.constant 256 : index
    %c0_15 = arith.constant 0 : index
    %33 = vector.load %arg4[%c256, %c0_15] : memref<512x128xf32, #tpu.memory_space<vmem>>, vector<128x128xf32>
    %cst_16 = arith.constant dense<0.000000e+00> : vector<48x128xf32>
    %34 = tpu.matmul %32, %33, %cst_16 {dimension_numbers = #tpu.dot_dimension_numbers<[1], [0], [0], [1], [0, 0, 1, 1], [], []>} : vector<48x128xf32>, vector<128x128xf32>, vector<48x128xf32> -> vector<48x128xf32>
    %35 = vector.extract_strided_slice %0 {offsets = [2, 0], sizes = [1, 128], strides = [1, 1]} : vector<4x128xf32> to vector<1x128xf32>
    %36 = vector.broadcast %35 : vector<1x128xf32> to vector<48x128xf32>
    %37 = arith.addf %34, %36 : vector<48x128xf32>
    %cst_17 = arith.constant 2.000000e-01 : f32
    %38 = vector.broadcast %cst_17 : f32 to vector<48x128xf32>
    %39 = arith.mulf %38, %37 : vector<48x128xf32>
    %40 = arith.maximumf %37, %39 : vector<48x128xf32>
    %c384 = arith.constant 384 : index
    %c0_18 = arith.constant 0 : index
    %41 = vector.load %arg4[%c384, %c0_18] : memref<512x128xf32, #tpu.memory_space<vmem>>, vector<128x128xf32>
    %cst_19 = arith.constant dense<0.000000e+00> : vector<48x128xf32>
    %42 = tpu.matmul %40, %41, %cst_19 {dimension_numbers = #tpu.dot_dimension_numbers<[1], [0], [0], [1], [0, 0, 1, 1], [], []>} : vector<48x128xf32>, vector<128x128xf32>, vector<48x128xf32> -> vector<48x128xf32>
    %43 = vector.extract_strided_slice %0 {offsets = [3, 0], sizes = [1, 128], strides = [1, 1]} : vector<4x128xf32> to vector<1x128xf32>
    %44 = vector.broadcast %43 : vector<1x128xf32> to vector<48x128xf32>
    %45 = arith.addf %42, %44 : vector<48x128xf32>
    %c0_20 = arith.constant 0 : index
    %c0_21 = arith.constant 0 : index
    %46 = vector.load %arg6[%c0_20, %c0_21] : memref<48x128xf32, #tpu.memory_space<vmem>>, vector<48x128xf32>
    tpu.vector_store %arg6[%c0_20, %c0_21], %45 {strides = array<i32>} : memref<48x128xf32, #tpu.memory_space<vmem>>, vector<48x128xf32>,
    return
  }
  func.func @transform_0(%arg0: i32) -> (i32, i32) {
    %c0_i32 = arith.constant 0 : i32
    %c0_i32_0 = arith.constant 0 : i32
    return %arg0, %c0_i32 : i32, i32
  }
  func.func @transform_1(%arg0: i32) -> (i32, i32) {
    %c0_i32 = arith.constant 0 : i32
    %c0_i32_0 = arith.constant 0 : i32
    %c0_i32_1 = arith.constant 0 : i32
    return %c0_i32, %c0_i32_0 : i32, i32
  }
  func.func @transform_2(%arg0: i32) -> (i32, i32) {
    %c0_i32 = arith.constant 0 : i32
    %c0_i32_0 = arith.constant 0 : i32
    %c0_i32_1 = arith.constant 0 : i32
    return %c0_i32, %c0_i32_0 : i32, i32
  }
  func.func @transform_3(%arg0: i32) -> (i32, i32) {
    %c0_i32 = arith.constant 0 : i32
    %c0_i32_0 = arith.constant 0 : i32
    %c0_i32_1 = arith.constant 0 : i32
    return %c0_i32, %c0_i32_0 : i32, i32
  }
  func.func @transform_4(%arg0: i32) -> (i32, i32) {
    %c0_i32 = arith.constant 0 : i32
    %c0_i32_0 = arith.constant 0 : i32
    %c0_i32_1 = arith.constant 0 : i32
    return %c0_i32, %c0_i32_0 : i32, i32
  }
  func.func @transform_5(%arg0: i32) -> (i32, i32) {
    %c0_i32 = arith.constant 0 : i32
    %c0_i32_0 = arith.constant 0 : i32
    return %arg0, %c0_i32 : i32, i32
  }
}

</mosaic_0001>

<bundles_post_ra>
// kernel: policy_cnn_forward.1
= control target key start
LH: loop header
LB: loop body
LE: loop exit
PB: predicated region body
PF: predicated region fallthrough
CT: control target
= control target key end

     0   :  { %10 = vsyncpa [#allocation3], 0  ;;  %s1531_s18 = smov 0   ;;  %s1864_s0 = inlined_call_operand.vmem [shape: f32[96,128], index: 0, kind: input, shape index: {}]   ;;  %s1865_s1 = inlined_call_operand.vmem [shape: f32[128,512], index: 1, kind: input, shape index: {}]   ;;  %s1866_s2 = inlined_call_operand.vmem [shape: f32[1,512], index: 2, kind: input, shape index: {}]   ;;  %s1867_s3 = inlined_call_operand.hbm [shape: f32[512,128], index: 3, kind: input, shape index: {}]   ;;  %s1868_s4 = inlined_call_operand.vmem [shape: f32[4,128], index: 4, kind: input, shape index: {}]   ;;  %s1869_s5 = inlined_call_operand.vmem [shape: f32[96,128], index: 5, kind: output, shape index: {}]  }
   0x1 LB: > { %s1174_s19 = sadd.s32 4294967295, %s1495_s18   ;;  %p1176_p0 = scmp.ge.s32.totalorder %s1495_s18, 1  ;;  %s1495_s18 = sphi %s1531_s18, %s16_s18  }
   0x2   : > { %p157_p1 = scmp.lt.s32.totalorder %s1495_s18, 3  ;;  %s1497_s20 = smov [#allocation2]  }
   0x3   : > { %s175_s21 = sshll.u32 %s1497_s20, 4  ;;  %p1545_p3 = scmp.eq.s32.totalorder %s1174_s19, 0  ;;  %s176_s21 = int_to_ptr.vmem [resolvable:$true] %s175_s21 }
   0x4   : > { %p1539_p2 = pnand %p1176_p0, %p157_p1  ;;  %s1470_s24 = scalar_lea.vmem %s176_s21, 8192 }
   0x5   : > { %p1471_p7 = scmp.ne.s32.totalorder %s176_s21, %s1470_s24  ;;  %p1478_p10 = scmp.lt.s32.totalorder %s176_s21, %s176_s21 }
   0x6   : > { %p1441_p4 = pneg %p1539_p2  ;;  %p1479_p11 = scmp.lt.s32.totalorder %s1470_s24, %s1470_s24 }
   0x8   : > { %p1442_p5 = pnand %p1545_p3, %p1441_p4  ;;  %p1480_p12 = por %p1479_p11, %p1478_p10 }
   0xa   : > { %p1461_p6 = pneg %p1442_p5 }
   0xc   : > { %p1473_p8 = pnand %p1471_p7, %p1461_p6 }
   0xe   : > { %p1474_p9 = pneg %p1473_p8 }
  0x10   : > { %p1481_p13 = pnand %p1480_p12, %p1474_p9 }
  0x12   : > { %1484 = shalt.err (!%p1481_p13)
}
  0x13   : > { %s1498_s25 = smov 128   ;;  %s1499_s26 = smov 8  }
  0x14   : > { %1444 = dma.hbm_to_vmem [thread:$0]  (!%p1442_p5), %s1867_s3, 8192, %s176_s21, [#allocation3], %s1498_s25, %s1498_s25, %s1499_s26  }
  0x15   : > { %203 = sbr.rel (%p1539_p2) target bundleno = 1090 (0x442), region = 40 }
  0x1a   : > { %1490 = dma.done.wait (%p1545_p3), [#allocation3], 8192  }
  0x1b   : > { %1492 = vsyncadd (%p1545_p3), [#allocation3], 4294959104  ;;  %v1500_v0 = vmov 0.0   ;;  %v311_v1 = vld [vmem:[%s1865_s1 + $0x1e8] sm:$0xff]  ;;  %v313_v2 = vld [vmem:[%s1865_s1 + $0x1f8] sm:$0xff]  ;;  %s1656_s20 = smul.u32 6, %s1174_s19 }
  0x1c   : > { %400 = vmatprep.mubr.f32.mxu0 %v1500_v0  ;;  %501 = vmatprep.mubr.f32.mxu1 %v1500_v0  ;;  %v310_v3 = vld [vmem:[%s1865_s1 + $0x1e0] sm:$0xff]  ;;  %v312_v4 = vld [vmem:[%s1865_s1 + $0x1f0] sm:$0xff]  ;;  %v307_v5 = vld [vmem:[%s1865_s1 + $0x1c8] sm:$0xff] }
  0x1d   : > { %336 = vmatprep.subr.mxu0 %v311_v1  ;;  %437 = vmatprep.subr.mxu1 %v313_v2  ;;  %v309_v6 = vld [vmem:[%s1865_s1 + $0x1d8] sm:$0xff]  ;;  %v306_v7 = vld [vmem:[%s1865_s1 + $0x1c0] sm:$0xff]  ;;  %v308_v8 = vld [vmem:[%s1865_s1 + $0x1d0] sm:$0xff]  ;;  %p232_p0 = scmp.lt.s32.totalorder %s1656_s20, 11 }
  0x1e   : > { %337 = vmatpush1.msra.mxu0 %v310_v3  ;;  %438 = vmatpush1.msra.mxu1 %v312_v4  ;;  %v303_v9 = vld [vmem:[%s1865_s1 + $0x1a8] sm:$0xff]  ;;  %v305_v10 = vld [vmem:[%s1865_s1 + $0x1b8] sm:$0xff]  ;;  %v302_v11 = vld [vmem:[%s1865_s1 + $0x1a0] sm:$0xff] }
  0x1f   : > { %338 = vmatprep.subr.mxu0 %v307_v5  ;;  %439 = vmatprep.subr.mxu1 %v309_v6  ;;  %v304_v12 = vld [vmem:[%s1865_s1 + $0x1b0] sm:$0xff]  ;;  %v299_v13 = vld [vmem:[%s1865_s1 + $0x188] sm:$0xff]  ;;  %v301_v14 = vld [vmem:[%s1865_s1 + $0x198] sm:$0xff]  ;;  %s1873_s20 = smov (!%p232_p0, %s1656_s20), 11 }
  0x20   : > { %339 = vmatpush1.msra.mxu0 %v306_v7  ;;  %440 = vmatpush1.msra.mxu1 %v308_v8  ;;  %v298_v15 = vld [vmem:[%s1865_s1 + $0x180] sm:$0xff]  ;;  %v300_v16 = vld [vmem:[%s1865_s1 + $0x190] sm:$0xff]  ;;  %v295_v17 = vld [vmem:[%s1865_s1 + $0x168] sm:$0xff]  ;;  %s1181_s23 = sshll.u32 %s1873_s20, 3 }
  0x21   : > { %340 = vmatprep.subr.mxu0 %v303_v9  ;;  %441 = vmatprep.subr.mxu1 %v305_v10  ;;  %v297_v18 = vld [vmem:[%s1865_s1 + $0x178] sm:$0xff]  ;;  %v294_v19 = vld [vmem:[%s1865_s1 + $0x160] sm:$0xff]  ;;  %v296_v20 = vld [vmem:[%s1865_s1 + $0x170] sm:$0xff]  ;;  %s1760_s12 = scalar_lea.vmem %s1864_s0, %s1181_s23  ;;  %s241_s30 = scalar_lea.vmem %s1869_s5, %s1181_s23 }
  0x22   : > { %341 = vmatpush1.msra.mxu0 %v302_v11  ;;  %442 = vmatpush1.msra.mxu1 %v304_v12  ;;  %v291_v21 = vld [vmem:[%s1865_s1 + $0x148] sm:$0xff]  ;;  %v293_v22 = vld [vmem:[%s1865_s1 + $0x158] sm:$0xff]  ;;  %v290_v23 = vld [vmem:[%s1865_s1 + $0x140] sm:$0xff] }
  0x23   : > { %342 = vmatprep.subr.mxu0 %v299_v13  ;;  %443 = vmatprep.subr.mxu1 %v301_v14  ;;  %v292_v24 = vld [vmem:[%s1865_s1 + $0x150] sm:$0xff]  ;;  %v287_v25 = vld [vmem:[%s1865_s1 + $0x128] sm:$0xff]  ;;  %v289_v26 = vld [vmem:[%s1865_s1 + $0x138] sm:$0xff] }
  0x24   : > { %343 = vmatpush1.msra.mxu0 %v298_v15  ;;  %444 = vmatpush1.msra.mxu1 %v300_v16  ;;  %v286_v27 = vld [vmem:[%s1865_s1 + $0x120] sm:$0xff]  ;;  %v288_v28 = vld [vmem:[%s1865_s1 + $0x130] sm:$0xff]  ;;  %v283_v29 = vld [vmem:[%s1865_s1 + $0x108] sm:$0xff] }
  0x25   : > { %344 = vmatprep.subr.mxu0 %v295_v17  ;;  %445 = vmatprep.subr.mxu1 %v297_v18  ;;  %v285_v30 = vld [vmem:[%s1865_s1 + $0x118] sm:$0xff]  ;;  %v282_v31 = vld [vmem:[%s1865_s1 + $0x100] sm:$0xff]  ;;  %v284_v32 = vld [vmem:[%s1865_s1 + $0x110] sm:$0xff] }
  0x26   : > { %345 = vmatpush1.msra.mxu0 %v294_v19  ;;  %446 = vmatpush1.msra.mxu1 %v296_v20  ;;  %v279_v33 = vld [vmem:[%s1865_s1 + $0xe8] sm:$0xff]  ;;  %v281_v34 = vld [vmem:[%s1865_s1 + $0xf8] sm:$0xff]  ;;  %v278_v35 = vld [vmem:[%s1865_s1 + $0xe0] sm:$0xff] }
  0x27   : > { %346 = vmatprep.subr.mxu0 %v291_v21  ;;  %447 = vmatprep.subr.mxu1 %v293_v22  ;;  %v280_v36 = vld [vmem:[%s1865_s1 + $0xf0] sm:$0xff]  ;;  %v275_v37 = vld [vmem:[%s1865_s1 + $0xc8] sm:$0xff]  ;;  %v277_v38 = vld [vmem:[%s1865_s1 + $0xd8] sm:$0xff] }
  0x28   : > { %347 = vmatpush1.msra.mxu0 %v290_v23  ;;  %448 = vmatpush1.msra.mxu1 %v292_v24  ;;  %v274_v39 = vld [vmem:[%s1865_s1 + $0xc0] sm:$0xff]  ;;  %v276_v40 = vld [vmem:[%s1865_s1 + $0xd0] sm:$0xff]  ;;  %v271_v41 = vld [vmem:[%s1865_s1 + $0xa8] sm:$0xff] }
  0x29   : > { %348 = vmatprep.subr.mxu0 %v287_v25  ;;  %449 = vmatprep.subr.mxu1 %v289_v26  ;;  %v273_v42 = vld [vmem:[%s1865_s1 + $0xb8] sm:$0xff]  ;;  %v270_v43 = vld [vmem:[%s1865_s1 + $0xa0] sm:$0xff]  ;;  %v272_v44 = vld [vmem:[%s1865_s1 + $0xb0] sm:$0xff] }
  0x2a   : > { %349 = vmatpush1.msra.mxu0 %v286_v27  ;;  %450 = vmatpush1.msra.mxu1 %v288_v28  ;;  %v267_v45 = vld [vmem:[%s1865_s1 + $0x88] sm:$0xff]  ;;  %v269_v46 = vld [vmem:[%s1865_s1 + $0x98] sm:$0xff]  ;;  %v266_v47 = vld [vmem:[%s1865_s1 + $0x80] sm:$0xff] }
  0x2b   : > { %350 = vmatprep.subr.mxu0 %v283_v29  ;;  %451 = vmatprep.subr.mxu1 %v285_v30  ;;  %v268_v48 = vld [vmem:[%s1865_s1 + $0x90] sm:$0xff]  ;;  %v263_v49 = vld [vmem:[%s1865_s1 + $0x68] sm:$0xff]  ;;  %v265_v50 = vld [vmem:[%s1865_s1 + $0x78] sm:$0xff] }
  0x2c   : > { %351 = vmatpush1.msra.mxu0 %v282_v31  ;;  %452 = vmatpush1.msra.mxu1 %v284_v32  ;;  %v262_v51 = vld [vmem:[%s1865_s1 + $0x60] sm:$0xff]  ;;  %v264_v52 = vld [vmem:[%s1865_s1 + $0x70] sm:$0xff]  ;;  %v259_v53 = vld [vmem:[%s1865_s1 + $0x48] sm:$0xff] }
  0x2d   : > { %352 = vmatprep.subr.mxu0 %v279_v33  ;;  %453 = vmatprep.subr.mxu1 %v281_v34  ;;  %v261_v54 = vld [vmem:[%s1865_s1 + $0x58] sm:$0xff]  ;;  %v258_v55 = vld [vmem:[%s1865_s1 + $0x40] sm:$0xff]  ;;  %v260_v56 = vld [vmem:[%s1865_s1 + $0x50] sm:$0xff]  ;;  %v316_v34 = vlaneseq }
  0x2e   : > { %353 = vmatpush1.msra.mxu0 %v278_v35  ;;  %454 = vmatpush1.msra.mxu1 %v280_v36  ;;  %v255_v57 = vld [vmem:[%s1865_s1 + $0x28] sm:$0xff]  ;;  %v257_v58 = vld [vmem:[%s1865_s1 + $0x38] sm:$0xff]  ;;  %v254_v59 = vld [vmem:[%s1865_s1 + $0x20] sm:$0xff] }
  0x2f   : > { %354 = vmatprep.subr.mxu0 %v275_v37  ;;  %455 = vmatprep.subr.mxu1 %v277_v38  ;;  %v256_v60 = vld [vmem:[%s1865_s1 + $0x30] sm:$0xff]  ;;  %v251_v61 = vld [vmem:[%s1865_s1 + $0x8] sm:$0xff]  ;;  %v253_v62 = vld [vmem:[%s1865_s1 + $0x18] sm:$0xff]  ;;  %v1790_v35 = vshrl.u32 %v316_v34, 7 }
  0x30   : > { %355 = vmatpush1.msra.mxu0 %v274_v39  ;;  %456 = vmatpush1.msra.mxu1 %v276_v40  ;;  %v250_v63 = vld [vmem:[%s1865_s1] sm:$0xff]  ;;  %v252_v1 = vld [vmem:[%s1865_s1 + $0x10] sm:$0xff]  ;;  %v619_v3 = vld [vmem:[#allocation2 + $0x78] sm:$0xff] }
  0x31   : > { %356 = vmatprep.subr.mxu0 %v271_v41  ;;  %457 = vmatprep.subr.mxu1 %v273_v42  ;;  %v244_v2 = vld [vmem:[%s1760_s12] sm:$0xff]  ;;  %v245_v4 = vld [vmem:[%s1760_s12 + $0x8] sm:$0xff]  ;;  %v618_v5 = vld [vmem:[#allocation2 + $0x70] sm:$0xff]  ;;  %v318_v36 = vsub.s32 0, %v1790_v35  ;;  %v326_v37 = vsub.s32 2, %v1790_v35  ;;  %v322_v39 = vsub.s32 1, %v1790_v35 }
  0x32   : > { %357 = vmatpush1.msra.mxu0 %v270_v43  ;;  %458 = vmatpush1.msra.mxu1 %v272_v44  ;;  %v246_v6 = vld [vmem:[%s1760_s12 + $0x10] sm:$0xff]  ;;  %v617_v7 = vld [vmem:[#allocation2 + $0x68] sm:$0xff]  ;;  %v247_v8 = vld [vmem:[%s1760_s12 + $0x18] sm:$0xff]  ;;  %v330_v40 = vsub.s32 3, %v1790_v35 }
  0x33   : > { %358 = vmatprep.subr.mxu0 %v267_v45  ;;  %459 = vmatprep.subr.mxu1 %v269_v46  ;;  %v616_v9 = vld [vmem:[#allocation2 + $0x60] sm:$0xff]  ;;  %v615_v11 = vld [vmem:[#allocation2 + $0x58] sm:$0xff]  ;;  %v249_v12 = vld [vmem:[%s1760_s12 + $0x28] sm:$0xff] }
  0x34   : > { %359 = vmatpush1.msra.mxu0 %v266_v47  ;;  %460 = vmatpush1.msra.mxu1 %v268_v48  ;;  %v248_v10 = vld [vmem:[%s1760_s12 + $0x20] sm:$0xff]  ;;  %v614_v13 = vld [vmem:[#allocation2 + $0x50] sm:$0xff]  ;;  %v613_v14 = vld [vmem:[#allocation2 + $0x48] sm:$0xff] }
  0x35   : > { %360 = vmatprep.subr.mxu0 %v263_v49  ;;  %461 = vmatprep.subr.mxu1 %v265_v50  ;;  %v612_v15 = vld [vmem:[#allocation2 + $0x40] sm:$0xff]  ;;  %v611_v16 = vld [vmem:[#allocation2 + $0x38] sm:$0xff]  ;;  %v610_v17 = vld [vmem:[#allocation2 + $0x30] sm:$0xff] }
  0x36   : > { %361 = vmatpush1.msra.mxu0 %v262_v51  ;;  %462 = vmatpush1.msra.mxu1 %v264_v52  ;;  %v608_v18 = vld [vmem:[#allocation2 + $0x20] sm:$0xff]  ;;  %v607_v19 = vld [vmem:[#allocation2 + $0x18] sm:$0xff]  ;;  %v606_v20 = vld [vmem:[#allocation2 + $0x10] sm:$0xff] }
  0x37   : > { %362 = vmatprep.subr.mxu0 %v259_v53  ;;  %463 = vmatprep.subr.mxu1 %v261_v54  ;;  %v605_v21 = vld [vmem:[#allocation2 + $0x8] sm:$0xff]  ;;  %v604_v22 = vld [vmem:[#allocation2] sm:$0xff]  ;;  %v746_v23 = vld [vmem:[#allocation2 + $0xf8] sm:$0xff] }
  0x38   : > { %363 = vmatpush1.msra.mxu0 %v258_v55  ;;  %464 = vmatpush1.msra.mxu1 %v260_v56  ;;  %v745_v24 = vld [vmem:[#allocation2 + $0xf0] sm:$0xff]  ;;  %v744_v25 = vld [vmem:[#allocation2 + $0xe8] sm:$0xff]  ;;  %v743_v26 = vld [vmem:[#allocation2 + $0xe0] sm:$0xff] }
  0x39   : > { %364 = vmatprep.subr.mxu0 %v255_v57  ;;  %465 = vmatprep.subr.mxu1 %v257_v58  ;;  %v742_v27 = vld [vmem:[#allocation2 + $0xd8] sm:$0xff]  ;;  %v741_v28 = vld [vmem:[#allocation2 + $0xd0] sm:$0xff]  ;;  %v740_v29 = vld [vmem:[#allocation2 + $0xc8] sm:$0xff] }
  0x3a   : > { %365 = vmatpush1.msra.mxu0 %v254_v59  ;;  %466 = vmatpush1.msra.mxu1 %v256_v60  ;;  %v739_v30 = vld [vmem:[#allocation2 + $0xc0] sm:$0xff]  ;;  %v738_v31 = vld [vmem:[#allocation2 + $0xb8] sm:$0xff]  ;;  %v737_v32 = vld [vmem:[#allocation2 + $0xb0] sm:$0xff] }
  0x3b   : > { %366 = vmatprep.subr.mxu0 %v251_v61  ;;  %467 = vmatprep.subr.mxu1 %v253_v62  ;;  %v736_v33 = vld [vmem:[#allocation2 + $0xa8] sm:$0xff]  ;;  %v314_v38 = vld [vmem:[%s1866_s2] sm:$0xf] }
  0x3c   : > { %367 = vmatpush1.msra.mxu0 %v250_v63  ;;  %468 = vmatpush1.msra.mxu1 %v252_v1  ;;  %v1801_v41 = vrot.slane %v314_v38, %v318_v36  ;;  %v1805_v42 = vrot.slane %v314_v38, %v326_v37  ;;  %v1809_v43 = vrot.slane %v314_v38, %v322_v39 }
  0x3d   : > { %401 = vmatmul.mubr.f32.vlgmr.msra.gmra.mxu0 %v244_v2  ;;  %502 = vmatmul.mubr.f32.vlgmr.msra.gmra.mxu1 %v244_v2  ;;  %v1813_v44 = vrot.slane %v314_v38, %v330_v40 }
  0x3e   : > { %406 = vmatprep.mubr.f32.mxu0 %v1500_v0  ;;  %507 = vmatprep.mubr.f32.mxu1 %v1500_v0 }
  0x3f   : > { %1273 = vmatprep.subr.mxu0 %v619_v3  ;;  %1314 = vmatprep.subr.mxu1 %v746_v23 }
  0x40   : > { %1274 = vmatpush3.msra.mxu0 %v619_v3  ;;  %1315 = vmatpush3.msra.mxu1 %v746_v23 }
  0x41   : > { %407 = vmatmul.mubr.f32.gmra.mxu0 %v245_v4  ;;  %508 = vmatmul.mubr.f32.gmra.mxu1 %v245_v4 }
  0x42   : > { %412 = vmatprep.mubr.f32.mxu0 %v1500_v0  ;;  %513 = vmatprep.mubr.f32.mxu1 %v1500_v0 }
  0x43   : > { %1275 = vmatprep.subr.mxu0 %v618_v5  ;;  %1316 = vmatprep.subr.mxu1 %v745_v24 }
  0x44   : > { %1276 = vmatpush3.msra.mxu0 %v618_v5  ;;  %1317 = vmatpush3.msra.mxu1 %v745_v24 }
  0x45   : > { %413 = vmatmul.mubr.f32.gmra.mxu0 %v246_v6  ;;  %514 = vmatmul.mubr.f32.gmra.mxu1 %v246_v6 }
  0x46   : > { %418 = vmatprep.mubr.f32.mxu0 %v1500_v0  ;;  %519 = vmatprep.mubr.f32.mxu1 %v1500_v0 }
  0x47   : > { %1277 = vmatprep.subr.mxu0 %v617_v7  ;;  %1318 = vmatprep.subr.mxu1 %v744_v25 }
  0x48   : > { %1278 = vmatpush3.msra.mxu0 %v617_v7  ;;  %1319 = vmatpush3.msra.mxu1 %v744_v25 }
  0x49   : > { %419 = vmatmul.mubr.f32.gmra.mxu0 %v247_v8  ;;  %520 = vmatmul.mubr.f32.gmra.mxu1 %v247_v8 }
  0x4a   : > { %424 = vmatprep.mubr.f32.mxu0 %v1500_v0  ;;  %525 = vmatprep.mubr.f32.mxu1 %v1500_v0 }
  0x4b   : > { %1279 = vmatprep.subr.mxu0 %v616_v9  ;;  %1320 = vmatprep.subr.mxu1 %v743_v26 }
  0x4c   : > { %1280 = vmatpush3.msra.mxu0 %v616_v9  ;;  %1321 = vmatpush3.msra.mxu1 %v743_v26 }
  0x4d   : > { %425 = vmatmul.mubr.f32.gmra.mxu0 %v248_v10  ;;  %526 = vmatmul.mubr.f32.gmra.mxu1 %v248_v10 }
  0x4e   : > { %430 = vmatprep.mubr.f32.mxu0 %v1500_v0  ;;  %531 = vmatprep.mubr.f32.mxu1 %v1500_v0  ;;  %v609_v0 = vld [vmem:[#allocation2 + $0x28] sm:$0xff] }
  0x4f   : > { %1281 = vmatprep.subr.mxu0 %v615_v11  ;;  %1322 = vmatprep.subr.mxu1 %v742_v27 }
  0x50   : > { %1282 = vmatpush3.msra.mxu0 %v615_v11  ;;  %1323 = vmatpush3.msra.mxu1 %v742_v27 }
  0x51   : > { %431 = vmatmul.mubr.f32.gmra.mxu0 %v249_v12  ;;  %532 = vmatmul.mubr.f32.gmra.mxu1 %v249_v12 }
  0x52   : > { %1283 = vmatprep.subr.mxu0 %v614_v13  ;;  %1324 = vmatprep.subr.mxu1 %v741_v28 }
  0x53   : > { %1284 = vmatpush3.msra.mxu0 %v614_v13  ;;  %1325 = vmatpush3.msra.mxu1 %v741_v28 }
  0x54   : > { %1285 = vmatprep.subr.mxu0 %v613_v14  ;;  %1326 = vmatprep.subr.mxu1 %v740_v29 }
  0x55   : > { %1286 = vmatpush3.msra.mxu0 %v613_v14  ;;  %1327 = vmatpush3.msra.mxu1 %v740_v29 }
  0x56   : > { %1287 = vmatprep.subr.mxu0 %v612_v15  ;;  %1328 = vmatprep.subr.mxu1 %v739_v30 }
  0x57   : > { %1288 = vmatpush3.msra.mxu0 %v612_v15  ;;  %1329 = vmatpush3.msra.mxu1 %v739_v30 }
  0x58   : > { %1289 = vmatprep.subr.mxu0 %v611_v16  ;;  %1330 = vmatprep.subr.mxu1 %v738_v31 }
  0x59   : > { %1290 = vmatpush3.msra.mxu0 %v611_v16  ;;  %1331 = vmatpush3.msra.mxu1 %v738_v31 }
  0x5a   : > { %1291 = vmatprep.subr.mxu0 %v610_v17  ;;  %1332 = vmatprep.subr.mxu1 %v737_v32 }
  0x5b   : > { %1292 = vmatpush3.msra.mxu0 %v610_v17  ;;  %1333 = vmatpush3.msra.mxu1 %v737_v32 }
  0x5c   : > { %1293 = vmatprep.subr.mxu0 %v609_v0  ;;  %1334 = vmatprep.subr.mxu1 %v736_v33 }
  0x5d   : > { %1294 = vmatpush3.msra.mxu0 %v609_v0  ;;  %1335 = vmatpush3.msra.mxu1 %v736_v33 }
  0x5e   : > { %1295 = vmatprep.subr.mxu0 %v608_v18 }
  0x5f   : > { %1296 = vmatpush3.msra.mxu0 %v608_v18 }
  0x60   : > { %1297 = vmatprep.subr.mxu0 %v607_v19 }
  0x61   : > { %1298 = vmatpush3.msra.mxu0 %v607_v19 }
  0x62   : > { %1299 = vmatprep.subr.mxu0 %v606_v20 }
  0x63   : > { %1300 = vmatpush3.msra.mxu0 %v606_v20 }
  0x64   : > { %1301 = vmatprep.subr.mxu0 %v605_v21 }
  0x65   : > { %1302 = vmatpush3.msra.mxu0 %v605_v21 }
  0x66   : > { %1303 = vmatprep.subr.mxu0 %v604_v22 }
  0x67   : > { %1304 = vmatpush3.msra.mxu0 %v604_v22 }
  0xfd   : > { %v402_v45 = vpop.f32.mrf.mxu0  ;;  %v503_v46 = vpop.f32.mrf.mxu1 }
  0xfe   : > { %v403_v47 = vadd.f32 %v402_v45, %v1801_v41  ;;  %v504_v48 = vadd.f32 %v503_v46, %v1805_v42 }
  0xff   : > { %v404_v49 = vpop.f32.mrf.mxu0  ;;  %v505_v50 = vpop.f32.mrf.mxu1 }
 0x100   : > { %v538_v51 = vmul.f32 0.2, %v403_v47  ;;  %v540_v52 = vmul.f32 0.2, %v504_v48  ;;  %v405_v53 = vadd.f32 %v404_v49, %v1809_v43  ;;  %v506_v54 = vadd.f32 %v505_v50, %v1813_v44 }
 0x101   : > { %v408_v55 = vpop.f32.mrf.mxu0  ;;  %v509_v56 = vpop.f32.mrf.mxu1 }
 0x102   : > { %v539_v57 = vmul.f32 0.2, %v405_v53  ;;  %v541_v58 = vmul.f32 0.2, %v506_v54  ;;  %v562_v59 = vmax.f32 %v403_v47, %v538_v51  ;;  %v564_v60 = vmax.f32 %v504_v48, %v540_v52 }
 0x103   : > { %v409_v61 = vadd.f32 %v408_v55, %v1801_v41  ;;  %v510_v62 = vadd.f32 %v509_v56, %v1805_v42  ;;  %v410_v63 = vpop.f32.mrf.mxu0  ;;  %v511_v1 = vpop.f32.mrf.mxu1 }
 0x104   : > { %v563_v2 = vmax.f32 %v405_v53, %v539_v57  ;;  %v565_v3 = vmax.f32 %v506_v54, %v541_v58  ;;  %v411_v4 = vadd.f32 %v410_v63, %v1809_v43  ;;  %v512_v5 = vadd.f32 %v511_v1, %v1813_v44 }
 0x105   : > { %v542_v6 = vmul.f32 0.2, %v409_v61  ;;  %v544_v7 = vmul.f32 0.2, %v510_v62  ;;  %v414_v8 = vpop.f32.mrf.mxu0  ;;  %v515_v9 = vpop.f32.mrf.mxu1 }
 0x106   : > { %v586_v10 = vmax.f32 %v562_v59, %v563_v2  ;;  %v592_v11 = vmax.f32 %v564_v60, %v565_v3  ;;  %v543_v12 = vmul.f32 0.2, %v411_v4  ;;  %v545_v13 = vmul.f32 0.2, %v512_v5 }
 0x107   : > { %v566_v14 = vmax.f32 %v409_v61, %v542_v6  ;;  %v568_v15 = vmax.f32 %v510_v62, %v544_v7  ;;  %v415_v16 = vadd.f32 %v414_v8, %v1801_v41  ;;  %v516_v17 = vadd.f32 %v515_v9, %v1805_v42  ;;  %v416_v0 = vpop.f32.mrf.mxu0  ;;  %v517_v18 = vpop.f32.mrf.mxu1 }
 0x108   : > { %v567_v19 = vmax.f32 %v411_v4, %v543_v12  ;;  %v569_v20 = vmax.f32 %v512_v5, %v545_v13  ;;  %v417_v21 = vadd.f32 %v416_v0, %v1809_v43  ;;  %v518_v22 = vadd.f32 %v517_v18, %v1813_v44 }
 0x109   : > { %v546_v23 = vmul.f32 0.2, %v415_v16  ;;  %v548_v24 = vmul.f32 0.2, %v516_v17  ;;  %v420_v25 = vpop.f32.mrf.mxu0  ;;  %v521_v26 = vpop.f32.mrf.mxu1  ;;  %v598_v27 = vmax.f32 %v586_v10, %v592_v11 }
 0x10a   : > { %v587_v28 = vmax.f32 %v566_v14, %v567_v19  ;;  %v593_v29 = vmax.f32 %v568_v15, %v569_v20  ;;  %v547_v30 = vmul.f32 0.2, %v417_v21  ;;  %v549_v31 = vmul.f32 0.2, %v518_v22 }
 0x10b   : > { %v570_v32 = vmax.f32 %v415_v16, %v546_v23  ;;  %v572_v33 = vmax.f32 %v516_v17, %v548_v24  ;;  %v421_v34 = vadd.f32 %v420_v25, %v1801_v41  ;;  %v522_v38 = vadd.f32 %v521_v26, %v1805_v42  ;;  %1305 = vmatprep.mubr.f32.mxu0 %v598_v27  ;;  %v422_v45 = vpop.f32.mrf.mxu0  ;;  %v523_v46 = vpop.f32.mrf.mxu1 }
 0x10c   : > { %v599_v47 = vmax.f32 %v587_v28, %v593_v29  ;;  %v571_v48 = vmax.f32 %v417_v21, %v547_v30  ;;  %v573_v49 = vmax.f32 %v518_v22, %v549_v31  ;;  %v423_v50 = vadd.f32 %v422_v45, %v1809_v43 }
 0x10d   : > { %v550_v51 = vmul.f32 0.2, %v421_v34  ;;  %v552_v52 = vmul.f32 0.2, %v522_v38  ;;  %v524_v53 = vadd.f32 %v523_v46, %v1813_v44  ;;  %v426_v54 = vpop.f32.mrf.mxu0  ;;  %v527_v55 = vpop.f32.mrf.mxu1 }
 0x10e   : > { %v588_v56 = vmax.f32 %v570_v32, %v571_v48  ;;  %v594_v57 = vmax.f32 %v572_v33, %v573_v49  ;;  %v551_v58 = vmul.f32 0.2, %v423_v50  ;;  %v427_v59 = vadd.f32 %v426_v54, %v1801_v41  ;;  %1306 = vmatmul.mubr.f32.vlgmr.msra.gmra.mxu0 %v599_v47  ;;  %v733_v47 = vld [vmem:[#allocation2 + $0x90] sm:$0xff]  ;;  %v732_v48 = vld [vmem:[#allocation2 + $0x88] sm:$0xff]  ;;  %v731_v49 = vld [vmem:[#allocation2 + $0x80] sm:$0xff] }
 0x10f   : > { %v574_v60 = vmax.f32 %v421_v34, %v550_v51  ;;  %v553_v61 = vmul.f32 0.2, %v524_v53  ;;  %v528_v62 = vadd.f32 %v527_v55, %v1805_v42  ;;  %v428_v63 = vpop.f32.mrf.mxu0  ;;  %v529_v1 = vpop.f32.mrf.mxu1  ;;  %v576_v6 = vmax.f32 %v522_v38, %v552_v52  ;;  %v872_v51 = vld [vmem:[#allocation2 + $0x170] sm:$0xff]  ;;  %v871_v52 = vld [vmem:[#allocation2 + $0x168] sm:$0xff]  ;;  %v869_v54 = vld [vmem:[#allocation2 + $0x158] sm:$0xff] }
 0x110   : > { %v575_v2 = vmax.f32 %v423_v50, %v551_v58  ;;  %v554_v3 = vmul.f32 0.2, %v427_v59  ;;  %v429_v4 = vadd.f32 %v428_v63, %v1809_v43  ;;  %v530_v5 = vadd.f32 %v529_v1, %v1813_v44  ;;  %v873_v50 = vld [vmem:[#allocation2 + $0x178] sm:$0xff]  ;;  %v868_v55 = vld [vmem:[#allocation2 + $0x150] sm:$0xff] }
 0x111   : > { %v577_v7 = vmax.f32 %v524_v53, %v553_v61  ;;  %v556_v8 = vmul.f32 0.2, %v528_v62  ;;  %v432_v9 = vpop.f32.mrf.mxu0  ;;  %v533_v10 = vpop.f32.mrf.mxu1  ;;  %v600_v11 = vmax.f32 %v588_v56, %v594_v57  ;;  %1355 = vmatprep.subr.mxu0 %v873_v50  ;;  %v870_v53 = vld [vmem:[#allocation2 + $0x160] sm:$0xff]  ;;  %v867_v56 = vld [vmem:[#allocation2 + $0x148] sm:$0xff]  ;;  %v865_v58 = vld [vmem:[#allocation2 + $0x138] sm:$0xff] }
 0x112   : > { %v589_v12 = vmax.f32 %v574_v60, %v575_v2  ;;  %v578_v13 = vmax.f32 %v427_v59, %v554_v3  ;;  %v555_v14 = vmul.f32 0.2, %v429_v4  ;;  %v557_v15 = vmul.f32 0.2, %v530_v5  ;;  %1356 = vmatpush3.msra.mxu0 %v873_v50  ;;  %v866_v57 = vld [vmem:[#allocation2 + $0x140] sm:$0xff]  ;;  %v864_v59 = vld [vmem:[#allocation2 + $0x130] sm:$0xff] }
 0x113   : > { %v595_v16 = vmax.f32 %v576_v6, %v577_v7  ;;  %v580_v17 = vmax.f32 %v528_v62, %v556_v8  ;;  %v433_v0 = vadd.f32 %v432_v9, %v1801_v41  ;;  %v534_v18 = vadd.f32 %v533_v10, %v1805_v42  ;;  %1308 = vmatprep.mubr.f32.mxu0 %v600_v11  ;;  %v434_v19 = vpop.f32.mrf.mxu0  ;;  %v535_v20 = vpop.f32.mrf.mxu1  ;;  %v863_v60 = vld [vmem:[#allocation2 + $0x128] sm:$0xff]  ;;  %v1842_v61 = vld [vmem:[%s1868_s4] sm:$0xf] }
 0x114   : > { %v579_v21 = vmax.f32 %v429_v4, %v555_v14  ;;  %v581_v22 = vmax.f32 %v530_v5, %v557_v15  ;;  %v435_v23 = vadd.f32 %v434_v19, %v1809_v43  ;;  %v536_v24 = vadd.f32 %v535_v20, %v1813_v44  ;;  %v735_v43 = vld [vmem:[#allocation2 + $0xa0] sm:$0xff]  ;;  %v734_v44 = vld [vmem:[#allocation2 + $0x98] sm:$0xff]  ;;  %1357 = vmatprep.subr.mxu0 %v872_v51 }
 0x115   : > { %v558_v25 = vmul.f32 0.2, %v433_v0  ;;  %v560_v26 = vmul.f32 0.2, %v534_v18  ;;  %v601_v27 = vmax.f32 %v589_v12, %v595_v16  ;;  %1336 = vmatprep.subr.mxu1 %v735_v43  ;;  %1358 = vmatpush3.msra.mxu0 %v872_v51  ;;  %v623_v62 = vrot.slane %v1842_v61, %v318_v36 }
 0x116   : > { %v590_v28 = vmax.f32 %v578_v13, %v579_v21  ;;  %v596_v29 = vmax.f32 %v580_v17, %v581_v22  ;;  %v559_v30 = vmul.f32 0.2, %v435_v23  ;;  %v561_v31 = vmul.f32 0.2, %v536_v24  ;;  %1337 = vmatpush3.msra.mxu1 %v735_v43  ;;  %1359 = vmatprep.subr.mxu0 %v871_v52  ;;  %v862_v22 = vld [vmem:[#allocation2 + $0x120] sm:$0xff] }
 0x117   : > { %v582_v32 = vmax.f32 %v433_v0, %v558_v25  ;;  %1309 = vmatmul.mubr.f32.gmra.mxu0 %v601_v27  ;;  %v584_v41 = vmax.f32 %v534_v18, %v560_v26  ;;  %1338 = vmatprep.subr.mxu1 %v734_v44  ;;  %v859_v25 = vld [vmem:[#allocation2 + $0x108] sm:$0xff]  ;;  %v858_v26 = vld [vmem:[#allocation2 + $0x100] sm:$0xff]  ;;  %v1000_v27 = vld [vmem:[#allocation2 + $0x1f8] sm:$0xff] }
 0x118   : > { %v583_v42 = vmax.f32 %v435_v23, %v559_v30  ;;  %v585_v33 = vmax.f32 %v536_v24, %v561_v31  ;;  %v602_v34 = vmax.f32 %v590_v28, %v596_v29  ;;  %1339 = vmatpush3.msra.mxu1 %v734_v44  ;;  %1360 = vmatpush3.msra.mxu0 %v871_v52  ;;  %v861_v23 = vld [vmem:[#allocation2 + $0x118] sm:$0xff]  ;;  %v860_v24 = vld [vmem:[#allocation2 + $0x110] sm:$0xff]  ;;  %v998_v29 = vld [vmem:[#allocation2 + $0x1e8] sm:$0xff] }
 0x119   : > { %1340 = vmatprep.subr.mxu1 %v733_v47  ;;  %1361 = vmatprep.subr.mxu0 %v870_v53  ;;  %v999_v28 = vld [vmem:[#allocation2 + $0x1f0] sm:$0xff]  ;;  %v997_v30 = vld [vmem:[#allocation2 + $0x1e0] sm:$0xff]  ;;  %v996_v31 = vld [vmem:[#allocation2 + $0x1d8] sm:$0xff] }
 0x11a   : > { %v591_v38 = vmax.f32 %v582_v32, %v583_v42  ;;  %v597_v45 = vmax.f32 %v584_v41, %v585_v33  ;;  %1311 = vmatprep.mubr.f32.mxu0 %v602_v34  ;;  %1341 = vmatpush3.msra.mxu1 %v733_v47  ;;  %v995_v32 = vld [vmem:[#allocation2 + $0x1d0] sm:$0xff]  ;;  %v994_v41 = vld [vmem:[#allocation2 + $0x1c8] sm:$0xff]  ;;  %v993_v42 = vld [vmem:[#allocation2 + $0x1c0] sm:$0xff] }
 0x11b   : > { %1342 = vmatprep.subr.mxu1 %v732_v48  ;;  %1362 = vmatpush3.msra.mxu0 %v870_v53  ;;  %v992_v33 = vld [vmem:[#allocation2 + $0x1b8] sm:$0xff]  ;;  %v991_v34 = vld [vmem:[#allocation2 + $0x1b0] sm:$0xff] }
 0x11c   : > { %v603_v46 = vmax.f32 %v591_v38, %v597_v45  ;;  %1343 = vmatpush3.msra.mxu1 %v732_v48  ;;  %1363 = vmatprep.subr.mxu0 %v869_v54  ;;  %v990_v38 = vld [vmem:[#allocation2 + $0x1a8] sm:$0xff]  ;;  %v750_v45 = vrot.slane %v1842_v61, %v322_v39 }
 0x11d   : > { %1344 = vmatprep.subr.mxu1 %v731_v49  ;;  %1364 = vmatpush3.msra.mxu0 %v869_v54 }
 0x11e   : > { %1312 = vmatmul.mubr.f32.gmra.mxu0 %v603_v46  ;;  %1345 = vmatpush3.msra.mxu1 %v731_v49 }
 0x11f   : > { %1365 = vmatprep.subr.mxu0 %v868_v55  ;;  %1396 = vmatprep.subr.mxu1 %v1000_v27 }
 0x120   : > { %1366 = vmatpush3.msra.mxu0 %v868_v55 }
 0x121   : > { %1367 = vmatprep.subr.mxu0 %v867_v56 }
 0x122   : > { %1368 = vmatpush3.msra.mxu0 %v867_v56 }
 0x123   : > { %1369 = vmatprep.subr.mxu0 %v866_v57 }
 0x124   : > { %1370 = vmatpush3.msra.mxu0 %v866_v57 }
 0x125   : > { %1371 = vmatprep.subr.mxu0 %v865_v58 }
 0x126   : > { %1372 = vmatpush3.msra.mxu0 %v865_v58 }
 0x127   : > { %1373 = vmatprep.subr.mxu0 %v864_v59 }
 0x128   : > { %1374 = vmatpush3.msra.mxu0 %v864_v59 }
 0x129   : > { %1375 = vmatprep.subr.mxu0 %v863_v60 }
 0x12a   : > { %1376 = vmatpush3.msra.mxu0 %v863_v60 }
 0x12b   : > { %1377 = vmatprep.subr.mxu0 %v862_v22 }
 0x12c   : > { %1378 = vmatpush3.msra.mxu0 %v862_v22 }
 0x12d   : > { %1379 = vmatprep.subr.mxu0 %v861_v23 }
 0x12e   : > { %1380 = vmatpush3.msra.mxu0 %v861_v23 }
 0x12f   : > { %1381 = vmatprep.subr.mxu0 %v860_v24 }
 0x130   : > { %1382 = vmatpush3.msra.mxu0 %v860_v24 }
 0x131   : > { %1383 = vmatprep.subr.mxu0 %v859_v25 }
 0x132   : > { %1384 = vmatpush3.msra.mxu0 %v859_v25 }
 0x133   : > { %1385 = vmatprep.subr.mxu0 %v858_v26 }
 0x134   : > { %1386 = vmatpush3.msra.mxu0 %v858_v26 }
 0x1ce   : > { %v1307_v63 = vpop.f32.mrf.mxu0 }
 0x1cf   : > { %v696_v1 = vadd.f32 %v1307_v63, %v623_v62 }
 0x1d0   : > { %v690_v2 = vpop.f32.mrf.mxu0 }
 0x1d1   : > { %v691_v3 = vadd.f32 %v690_v2, %v623_v62  ;;  %v720_v4 = vmul.f32 0.2, %v696_v1 }
 0x1d3   : > { %v719_v5 = vmul.f32 0.2, %v691_v3  ;;  %v726_v7 = vmax.f32 %v696_v1, %v720_v4 }
 0x1d5   : > { %v725_v6 = vmax.f32 %v691_v3, %v719_v5  ;;  %v989_v5 = vld [vmem:[#allocation2 + $0x1a0] sm:$0xff] }
 0x1d7   : > { %v1310_v8 = vpop.f32.mrf.mxu0  ;;  %1346 = vmatprep.mubr.f32.mxu1 %v725_v6  ;;  %v988_v6 = vld [vmem:[#allocation2 + $0x198] sm:$0xff] }
 0x1d8   : > { %v706_v9 = vadd.f32 %v1310_v8, %v623_v62  ;;  %1347 = vmatmul.mubr.f32.vlgmr.msra.gmra.mxu1 %v726_v7  ;;  %v987_v7 = vld [vmem:[#allocation2 + $0x190] sm:$0xff]  ;;  %v986_v8 = vld [vmem:[#allocation2 + $0x188] sm:$0xff] }
 0x1d9   : > { %v700_v10 = vpop.f32.mrf.mxu0  ;;  %1397 = vmatpush3.msra.mxu1 %v1000_v27 }
 0x1da   : > { %v701_v11 = vadd.f32 %v700_v10, %v623_v62  ;;  %v722_v12 = vmul.f32 0.2, %v706_v9  ;;  %1398 = vmatprep.subr.mxu1 %v999_v28  ;;  %v877_v10 = vrot.slane %v1842_v61, %v326_v37 }
 0x1db   : > { %1399 = vmatpush3.msra.mxu1 %v999_v28 }
 0x1dc   : > { %v721_v13 = vmul.f32 0.2, %v701_v11  ;;  %v728_v16 = vmax.f32 %v706_v9, %v722_v12  ;;  %1400 = vmatprep.subr.mxu1 %v998_v29  ;;  %v985_v9 = vld [vmem:[#allocation2 + $0x180] sm:$0xff] }
 0x1dd   : > { %1401 = vmatpush3.msra.mxu1 %v998_v29 }
 0x1de   : > { %v727_v14 = vmax.f32 %v701_v11, %v721_v13  ;;  %v1313_v15 = vpop.f32.mrf.mxu0  ;;  %1402 = vmatprep.subr.mxu1 %v997_v30 }
 0x1df   : > { %v716_v36 = vadd.f32 %v1313_v15, %v623_v62  ;;  %1403 = vmatpush3.msra.mxu1 %v997_v30 }
 0x1e0   : > { %1349 = vmatprep.mubr.f32.mxu1 %v727_v14  ;;  %v710_v17 = vpop.f32.mrf.mxu0  ;;  %1404 = vmatprep.subr.mxu1 %v996_v31 }
 0x1e1   : > { %v711_v0 = vadd.f32 %v710_v17, %v623_v62  ;;  %1350 = vmatmul.mubr.f32.gmra.mxu1 %v728_v16  ;;  %v724_v18 = vmul.f32 0.2, %v716_v36 }
 0x1e2   : > { %1405 = vmatpush3.msra.mxu1 %v996_v31 }
 0x1e3   : > { %v723_v19 = vmul.f32 0.2, %v711_v0  ;;  %v730_v21 = vmax.f32 %v716_v36, %v724_v18  ;;  %1406 = vmatprep.subr.mxu1 %v995_v32 }
 0x1e4   : > { %1407 = vmatpush3.msra.mxu1 %v995_v32  ;;  %v1004_v32 = vrot.slane %v1842_v61, %v330_v40 }
 0x1e5   : > { %v729_v20 = vmax.f32 %v711_v0, %v723_v19  ;;  %1408 = vmatprep.subr.mxu1 %v994_v41 }
 0x1e6   : > { %1409 = vmatpush3.msra.mxu1 %v994_v41 }
 0x1e7   : > { %1352 = vmatprep.mubr.f32.mxu1 %v729_v20  ;;  %1410 = vmatprep.subr.mxu1 %v993_v42 }
 0x1e8   : > { %1353 = vmatmul.mubr.f32.gmra.mxu1 %v730_v21 }
 0x1e9   : > { %1411 = vmatpush3.msra.mxu1 %v993_v42 }
 0x1ea   : > { %1412 = vmatprep.subr.mxu1 %v992_v33 }
 0x1eb   : > { %1413 = vmatpush3.msra.mxu1 %v992_v33 }
 0x1ec   : > { %1414 = vmatprep.subr.mxu1 %v991_v34 }
 0x1ed   : > { %1415 = vmatpush3.msra.mxu1 %v991_v34 }
 0x1ee   : > { %1416 = vmatprep.subr.mxu1 %v990_v38 }
 0x1ef   : > { %1417 = vmatpush3.msra.mxu1 %v990_v38 }
 0x1f0   : > { %1418 = vmatprep.subr.mxu1 %v989_v5 }
 0x1f1   : > { %1419 = vmatpush3.msra.mxu1 %v989_v5 }
 0x1f2   : > { %1420 = vmatprep.subr.mxu1 %v988_v6 }
 0x1f3   : > { %1421 = vmatpush3.msra.mxu1 %v988_v6 }
 0x1f4   : > { %1422 = vmatprep.subr.mxu1 %v987_v7 }
 0x1f5   : > { %1423 = vmatpush3.msra.mxu1 %v987_v7 }
 0x1f6   : > { %1424 = vmatprep.subr.mxu1 %v986_v8 }
 0x1f7   : > { %1425 = vmatpush3.msra.mxu1 %v986_v8 }
 0x1f8   : > { %1426 = vmatprep.subr.mxu1 %v985_v9 }
 0x1f9   : > { %1427 = vmatpush3.msra.mxu1 %v985_v9 }
 0x298   : > { %v1348_v46 = vpop.f32.mrf.mxu1 }
 0x299   : > { %v823_v43 = vadd.f32 %v1348_v46, %v750_v45 }
 0x29a   : > { %v817_v44 = vpop.f32.mrf.mxu1 }
 0x29b   : > { %v818_v47 = vadd.f32 %v817_v44, %v750_v45  ;;  %v847_v48 = vmul.f32 0.2, %v823_v43 }
 0x29d   : > { %v846_v49 = vmul.f32 0.2, %v818_v47  ;;  %v853_v51 = vmax.f32 %v823_v43, %v847_v48 }
 0x29f   : > { %v852_v50 = vmax.f32 %v818_v47, %v846_v49 }
 0x2a1   : > { %v1351_v52 = vpop.f32.mrf.mxu1  ;;  %1387 = vmatprep.mubr.f32.mxu0 %v852_v50 }
 0x2a2   : > { %v833_v53 = vadd.f32 %v1351_v52, %v750_v45  ;;  %1388 = vmatmul.mubr.f32.vlgmr.msra.gmra.mxu0 %v853_v51 }
 0x2a3   : > { %v827_v54 = vpop.f32.mrf.mxu1 }
 0x2a4   : > { %v828_v55 = vadd.f32 %v827_v54, %v750_v45  ;;  %v849_v56 = vmul.f32 0.2, %v833_v53 }
 0x2a6   : > { %v848_v57 = vmul.f32 0.2, %v828_v55  ;;  %v855_v60 = vmax.f32 %v833_v53, %v849_v56 }
 0x2a8   : > { %v854_v58 = vmax.f32 %v828_v55, %v848_v57  ;;  %v1354_v59 = vpop.f32.mrf.mxu1 }
 0x2a9   : > { %v843_v39 = vadd.f32 %v1354_v59, %v750_v45 }
 0x2aa   : > { %1390 = vmatprep.mubr.f32.mxu0 %v854_v58  ;;  %v837_v62 = vpop.f32.mrf.mxu1 }
 0x2ab   : > { %v838_v63 = vadd.f32 %v837_v62, %v750_v45  ;;  %1391 = vmatmul.mubr.f32.gmra.mxu0 %v855_v60  ;;  %v851_v1 = vmul.f32 0.2, %v843_v39 }
 0x2ad   : > { %v850_v2 = vmul.f32 0.2, %v838_v63  ;;  %v857_v4 = vmax.f32 %v843_v39, %v851_v1 }
 0x2af   : > { %v856_v3 = vmax.f32 %v838_v63, %v850_v2 }
 0x2b1   : > { %1393 = vmatprep.mubr.f32.mxu0 %v856_v3 }
 0x2b2   : > { %1394 = vmatmul.mubr.f32.gmra.mxu0 %v857_v4 }
 0x362   : > { %v1389_v11 = vpop.f32.mrf.mxu0 }
 0x363   : > { %v950_v12 = vadd.f32 %v1389_v11, %v877_v10 }
 0x364   : > { %v944_v13 = vpop.f32.mrf.mxu0 }
 0x365   : > { %v945_v14 = vadd.f32 %v944_v13, %v877_v10  ;;  %v974_v15 = vmul.f32 0.2, %v950_v12 }
 0x367   : > { %v973_v16 = vmul.f32 0.2, %v945_v14  ;;  %v980_v17 = vmax.f32 %v950_v12, %v974_v15 }
 0x369   : > { %v979_v36 = vmax.f32 %v945_v14, %v973_v16 }
 0x36b   : > { %v1392_v0 = vpop.f32.mrf.mxu0  ;;  %1428 = vmatprep.mubr.f32.mxu1 %v979_v36 }
 0x36c   : > { %v960_v18 = vadd.f32 %v1392_v0, %v877_v10  ;;  %1429 = vmatmul.mubr.f32.vlgmr.msra.gmra.mxu1 %v980_v17 }
 0x36d   : > { %v954_v19 = vpop.f32.mrf.mxu0 }
 0x36e   : > { %v955_v20 = vadd.f32 %v954_v19, %v877_v10  ;;  %v976_v21 = vmul.f32 0.2, %v960_v18 }
 0x370   : > { %v975_v22 = vmul.f32 0.2, %v955_v20  ;;  %v982_v37 = vmax.f32 %v960_v18, %v976_v21 }
 0x372   : > { %v981_v23 = vmax.f32 %v955_v20, %v975_v22  ;;  %v1395_v24 = vpop.f32.mrf.mxu0 }
 0x373   : > { %v970_v25 = vadd.f32 %v1395_v24, %v877_v10 }
 0x374   : > { %1431 = vmatprep.mubr.f32.mxu1 %v981_v23  ;;  %v964_v26 = vpop.f32.mrf.mxu0 }
 0x375   : > { %v965_v27 = vadd.f32 %v964_v26, %v877_v10  ;;  %1432 = vmatmul.mubr.f32.gmra.mxu1 %v982_v37  ;;  %v978_v28 = vmul.f32 0.2, %v970_v25 }
 0x377   : > { %v977_v29 = vmul.f32 0.2, %v965_v27  ;;  %v984_v31 = vmax.f32 %v970_v25, %v978_v28 }
 0x379   : > { %v983_v30 = vmax.f32 %v965_v27, %v977_v29 }
 0x37b   : > { %1434 = vmatprep.mubr.f32.mxu1 %v983_v30 }
 0x37c   : > { %1435 = vmatmul.mubr.f32.gmra.mxu1 %v984_v31 }
 0x42c   : > { %v1430_v41 = vpop.f32.mrf.mxu1 }
 0x42d   : > { %v1077_v42 = vadd.f32 %v1430_v41, %v1004_v32 }
 0x42e   : > { %v1071_v33 = vpop.f32.mrf.mxu1 }
 0x42f   : > { %1101 = vst [vmem:[%s241_s30 + $0x8] sm:$0xff] %v1077_v42  ;;  %v1072_v34 = vadd.f32 %v1071_v33, %v1004_v32 }
 0x431   : > { %1100 = vst [vmem:[%s241_s30] sm:$0xff] %v1072_v34 }
 0x435   : > { %v1433_v38 = vpop.f32.mrf.mxu1 }
 0x436   : > { %v1087_v45 = vadd.f32 %v1433_v38, %v1004_v32 }
 0x437   : > { %v1081_v46 = vpop.f32.mrf.mxu1 }
 0x438   : > { %1103 = vst [vmem:[%s241_s30 + $0x18] sm:$0xff] %v1087_v45  ;;  %v1082_v43 = vadd.f32 %v1081_v46, %v1004_v32 }
 0x43a   : > { %1102 = vst [vmem:[%s241_s30 + $0x10] sm:$0xff] %v1082_v43 }
 0x43c   : > { %v1436_v35 = vpop.f32.mrf.mxu1 }
 0x43d   : > { %v1097_v44 = vadd.f32 %v1436_v35, %v1004_v32 }
 0x43e   : > { %v1091_v40 = vpop.f32.mrf.mxu1 }
 0x43f   : > { %1105 = vst [vmem:[%s241_s30 + $0x28] sm:$0xff] %v1097_v44  ;;  %v1092_v61 = vadd.f32 %v1091_v40, %v1004_v32 }
 0x441   : > { %1104 = vst [vmem:[%s241_s30 + $0x20] sm:$0xff] %v1092_v61 }
 0x442 PF: > { %s16_s18 = sadd.s32 1, %s1495_s18  }
 0x443   : > { %p13_p1 = scmp.ge.s32.totalorder %s16_s18, 4  }
 0x445   :  { %15 = sbr.rel (!%p13_p1) target bundleno = 1 (0x1), region = 75 }
 0x44a   :  { %1128 = vsyncpa [#allocation3], 1 }
 0x44b   :  { %1130 = vsyncpa [#allocation3 + $0x1], 1 }

</bundles_post_ra>
